<compile_context>
chip_gen: v5e
topology: v5e:2x2
jax: 0.10.0
libtpu: 0.0.40
codegen_flags: <defaults>
</compile_context>

<pallas_src>
import functools

import jax
import jax.numpy as jnp
from jax.experimental import pallas as pl
from jax.experimental.pallas import tpu as pltpu


def _mlp_kernel(*refs, relu_flags):
    """Fused MLP: refs = (x, w0, b0, w1, b1, ..., w_{L-1}, b_{L-1}, out).

    Weights are pre-transposed to [in, out]; biases are [1, out].
    """
    x_ref = refs[0]
    o_ref = refs[-1]
    wb_refs = refs[1:-1]

    h = x_ref[...]                       # [TILE_B, in0], already f32
    for i, apply_relu in enumerate(relu_flags):
        w = wb_refs[2 * i][...]          # [in_i, out_i]  (pre-transposed)
        b = wb_refs[2 * i + 1][...]      # [1, out_i]
        if apply_relu:
            h = jnp.maximum(h, 0.0)
        # MXU matmul with f32 accumulation; bias broadcasts over batch rows.
        h = jnp.dot(h, w, preferred_element_type=jnp.float32) + b
    o_ref[...] = h.astype(o_ref.dtype)


@functools.partial(jax.jit, static_argnames=("final_relu", "tile_b"))
def mlp_pallas(x, weights, biases, final_relu=False, tile_b=16):
    """Run the whole MLP in a single fused Pallas kernel, tiled over batch.

    x:       [B, layer_sizes[0]]  float32
    weights: list of [out_i, in_i] float32 (PyTorch Linear layout)
    biases:  list of [1, out_i]    float32
    """
    num_layers = len(weights)
    final_relu_layer = num_layers if final_relu else num_layers - 1
    relu_flags = tuple(i < final_relu_layer for i in range(num_layers))

    B, in_dim = x.shape
    out_dim = weights[-1].shape[0]

    # Pre-transpose weights to [in, out] at trace time (free XLA layout
    # plumbing) so the kernel feeds the MXU its native orientation.
    weights_t = [jnp.transpose(w) for w in weights]

    # Pad batch up to a multiple of the tile (multiple of 8 sublanes).
    pad_b = (-B) % tile_b
    if pad_b:
        x = jnp.pad(x, ((0, pad_b), (0, 0)))
    b_padded = B + pad_b
    grid = (b_padded // tile_b,)

    # Activations tiled over batch; tiny weights/biases stay VMEM-resident
    # (constant index_map, loaded once).
    in_specs = [pl.BlockSpec((tile_b, in_dim), lambda i: (i, 0))]
    args = [x]
    for w_t, b in zip(weights_t, biases):
        in_specs.append(pl.BlockSpec(w_t.shape, lambda i: (0, 0)))
        in_specs.append(pl.BlockSpec(b.shape, lambda i: (0, 0)))
        args.append(w_t)
        args.append(b)

    out = pl.pallas_call(
        functools.partial(_mlp_kernel, relu_flags=relu_flags),
        out_shape=jax.ShapeDtypeStruct((b_padded, out_dim), jnp.float32),
        grid=grid,
        in_specs=in_specs,
        out_specs=pl.BlockSpec((tile_b, out_dim), lambda i: (i, 0)),
        compiler_params=pltpu.CompilerParams(
            dimension_semantics=("parallel",)),
    )(*args)

    if pad_b:
        out = out[:B]
    return out


def mlp_reference(x, weights, biases, final_relu=False):
    """Pure-JAX reference mirroring the PyTorch nn.Sequential exactly."""
    num_layers = len(weights)
    final_relu_layer = num_layers if final_relu else num_layers - 1
    h = x
    for i in range(num_layers):
        if i < final_relu_layer:
            h = jnp.maximum(h, 0.0)
        h = h @ weights[i].T + biases[i][0]
    return h


if __name__ == "__main__":
    # Synthetic config: MLP([32, 64, 48, 16], final_relu=False)
    layer_sizes = [32, 64, 48, 16]
    batch = 64          # multiple of the 16-row batch tile -> 4 grid steps

    key = jax.random.PRNGKey(0)
    k_x, *k_layers = jax.random.split(key, 1 + 2 * (len(layer_sizes) - 1))

    x = jax.random.normal(k_x, (batch, layer_sizes[0]), dtype=jnp.float32)

    weights, biases = [], []
    for i in range(len(layer_sizes) - 1):
        fan_in, fan_out = layer_sizes[i], layer_sizes[i + 1]
        kw, kb = k_layers[2 * i], k_layers[2 * i + 1]
        bound = 1.0 / (fan_in ** 0.5)  # matches torch.nn.Linear default scale
        w = jax.random.uniform(kw, (fan_out, fan_in), jnp.float32, -bound, bound)
        b = jax.random.uniform(kb, (1, fan_out), jnp.float32, -bound, bound)
        weights.append(w)
        biases.append(b)

    out = mlp_pallas(x, weights, biases, final_relu=False, tile_b=16)
    out = jax.block_until_ready(out)

    ref = mlp_reference(x, weights, biases, final_relu=False)
    assert out.shape == (batch, layer_sizes[-1])
    assert jnp.allclose(out, ref, atol=1e-5, rtol=1e-5), "mismatch vs reference"

    print("KERNEL_OK")
</pallas_src>

<mosaic_0001>
module attributes {stable_mosaic.version = 11 : i64} {
  func.func @_mlp_kernel(%arg0: i32, %arg1: memref<16x32xf32, #tpu.memory_space<vmem>>, %arg2: memref<32x64xf32, #tpu.memory_space<vmem>>, %arg3: memref<1x64xf32, #tpu.memory_space<vmem>>, %arg4: memref<64x48xf32, #tpu.memory_space<vmem>>, %arg5: memref<1x48xf32, #tpu.memory_space<vmem>>, %arg6: memref<48x16xf32, #tpu.memory_space<vmem>>, %arg7: memref<1x16xf32, #tpu.memory_space<vmem>>, %arg8: memref<16x16xf32, #tpu.memory_space<vmem>>) attributes {dimension_semantics = [#tpu.dimension_semantics<parallel>], iteration_bounds = array<i64: 4>, scalar_prefetch = 0 : i64, scratch_operands = 0 : i64, tpu.core_type = #tpu.core_type<tc>, window_params = [{transform_indices = @transform_0, window_bounds = array<i64: 16, 32>}, {pipeline_mode = #tpu.pipeline_mode<synchronous>, transform_indices = @transform_1, window_bounds = array<i64: 32, 64>}, {pipeline_mode = #tpu.pipeline_mode<synchronous>, transform_indices = @transform_2, window_bounds = array<i64: 1, 64>}, {pipeline_mode = #tpu.pipeline_mode<synchronous>, transform_indices = @transform_3, window_bounds = array<i64: 64, 48>}, {pipeline_mode = #tpu.pipeline_mode<synchronous>, transform_indices = @transform_4, window_bounds = array<i64: 1, 48>}, {pipeline_mode = #tpu.pipeline_mode<synchronous>, transform_indices = @transform_5, window_bounds = array<i64: 48, 16>}, {pipeline_mode = #tpu.pipeline_mode<synchronous>, transform_indices = @transform_6, window_bounds = array<i64: 1, 16>}, {transform_indices = @transform_7, window_bounds = array<i64: 16, 16>}]} {
    %c0 = arith.constant 0 : index
    %c0_0 = arith.constant 0 : index
    %0 = vector.load %arg1[%c0, %c0_0] : memref<16x32xf32, #tpu.memory_space<vmem>>, vector<16x32xf32>
    %c0_1 = arith.constant 0 : index
    %c0_2 = arith.constant 0 : index
    %1 = vector.load %arg2[%c0_1, %c0_2] : memref<32x64xf32, #tpu.memory_space<vmem>>, vector<32x64xf32>
    %c0_3 = arith.constant 0 : index
    %c0_4 = arith.constant 0 : index
    %2 = vector.load %arg3[%c0_3, %c0_4] : memref<1x64xf32, #tpu.memory_space<vmem>>, vector<1x64xf32>
    %cst = arith.constant 0.000000e+00 : f32
    %3 = vector.broadcast %cst : f32 to vector<16x32xf32>
    %4 = arith.maximumf %0, %3 : vector<16x32xf32>
    %cst_5 = arith.constant dense<0.000000e+00> : vector<16x64xf32>
    %5 = tpu.matmul %4, %1, %cst_5 {dimension_numbers = #tpu.dot_dimension_numbers<[1], [0], [0], [1], [0, 0, 1, 1], [], []>} : vector<16x32xf32>, vector<32x64xf32>, vector<16x64xf32> -> vector<16x64xf32>
    %6 = vector.broadcast %2 : vector<1x64xf32> to vector<16x64xf32>
    %7 = arith.addf %5, %6 : vector<16x64xf32>
    %c0_6 = arith.constant 0 : index
    %c0_7 = arith.constant 0 : index
    %8 = vector.load %arg4[%c0_6, %c0_7] : memref<64x48xf32, #tpu.memory_space<vmem>>, vector<64x48xf32>
    %c0_8 = arith.constant 0 : index
    %c0_9 = arith.constant 0 : index
    %9 = vector.load %arg5[%c0_8, %c0_9] : memref<1x48xf32, #tpu.memory_space<vmem>>, vector<1x48xf32>
    %cst_10 = arith.constant 0.000000e+00 : f32
    %10 = vector.broadcast %cst_10 : f32 to vector<16x64xf32>
    %11 = arith.maximumf %7, %10 : vector<16x64xf32>
    %cst_11 = arith.constant dense<0.000000e+00> : vector<16x48xf32>
    %12 = tpu.matmul %11, %8, %cst_11 {dimension_numbers = #tpu.dot_dimension_numbers<[1], [0], [0], [1], [0, 0, 1, 1], [], []>} : vector<16x64xf32>, vector<64x48xf32>, vector<16x48xf32> -> vector<16x48xf32>
    %13 = vector.broadcast %9 : vector<1x48xf32> to vector<16x48xf32>
    %14 = arith.addf %12, %13 : vector<16x48xf32>
    %c0_12 = arith.constant 0 : index
    %c0_13 = arith.constant 0 : index
    %15 = vector.load %arg6[%c0_12, %c0_13] : memref<48x16xf32, #tpu.memory_space<vmem>>, vector<48x16xf32>
    %c0_14 = arith.constant 0 : index
    %c0_15 = arith.constant 0 : index
    %16 = vector.load %arg7[%c0_14, %c0_15] : memref<1x16xf32, #tpu.memory_space<vmem>>, vector<1x16xf32>
    %cst_16 = arith.constant dense<0.000000e+00> : vector<16x16xf32>
    %17 = tpu.matmul %14, %15, %cst_16 {dimension_numbers = #tpu.dot_dimension_numbers<[1], [0], [0], [1], [0, 0, 1, 1], [], []>} : vector<16x48xf32>, vector<48x16xf32>, vector<16x16xf32> -> vector<16x16xf32>
    %18 = vector.broadcast %16 : vector<1x16xf32> to vector<16x16xf32>
    %19 = arith.addf %17, %18 : vector<16x16xf32>
    %c0_17 = arith.constant 0 : index
    %c0_18 = arith.constant 0 : index
    %20 = vector.load %arg8[%c0_17, %c0_18] : memref<16x16xf32, #tpu.memory_space<vmem>>, vector<16x16xf32>
    tpu.vector_store %arg8[%c0_17, %c0_18], %19 {strides = array<i32>} : memref<16x16xf32, #tpu.memory_space<vmem>>, vector<16x16xf32>,
    return
  }
  func.func @transform_0(%arg0: i32) -> (i32, i32) {
    %c0_i32 = arith.constant 0 : i32
    %c0_i32_0 = arith.constant 0 : i32
    return %arg0, %c0_i32 : i32, i32
  }
  func.func @transform_1(%arg0: i32) -> (i32, i32) {
    %c0_i32 = arith.constant 0 : i32
    %c0_i32_0 = arith.constant 0 : i32
    %c0_i32_1 = arith.constant 0 : i32
    return %c0_i32, %c0_i32_0 : i32, i32
  }
  func.func @transform_2(%arg0: i32) -> (i32, i32) {
    %c0_i32 = arith.constant 0 : i32
    %c0_i32_0 = arith.constant 0 : i32
    %c0_i32_1 = arith.constant 0 : i32
    return %c0_i32, %c0_i32_0 : i32, i32
  }
  func.func @transform_3(%arg0: i32) -> (i32, i32) {
    %c0_i32 = arith.constant 0 : i32
    %c0_i32_0 = arith.constant 0 : i32
    %c0_i32_1 = arith.constant 0 : i32
    return %c0_i32, %c0_i32_0 : i32, i32
  }
  func.func @transform_4(%arg0: i32) -> (i32, i32) {
    %c0_i32 = arith.constant 0 : i32
    %c0_i32_0 = arith.constant 0 : i32
    %c0_i32_1 = arith.constant 0 : i32
    return %c0_i32, %c0_i32_0 : i32, i32
  }
  func.func @transform_5(%arg0: i32) -> (i32, i32) {
    %c0_i32 = arith.constant 0 : i32
    %c0_i32_0 = arith.constant 0 : i32
    %c0_i32_1 = arith.constant 0 : i32
    return %c0_i32, %c0_i32_0 : i32, i32
  }
  func.func @transform_6(%arg0: i32) -> (i32, i32) {
    %c0_i32 = arith.constant 0 : i32
    %c0_i32_0 = arith.constant 0 : i32
    %c0_i32_1 = arith.constant 0 : i32
    return %c0_i32, %c0_i32_0 : i32, i32
  }
  func.func @transform_7(%arg0: i32) -> (i32, i32) {
    %c0_i32 = arith.constant 0 : i32
    %c0_i32_0 = arith.constant 0 : i32
    return %arg0, %c0_i32 : i32, i32
  }
}

</mosaic_0001>

<bundles_post_ra>
// kernel: mlp_pallas.1
= control target key start
LH: loop header
LB: loop body
LE: loop exit
PB: predicated region body
PF: predicated region fallthrough
CT: control target
= control target key end

     0   :  { %s551_s24 = smov 0   ;;  %s638_s0 = inlined_call_operand.vmem [shape: f32[64,32], index: 0, kind: input, shape index: {}]   ;;  %s639_s1 = inlined_call_operand.vmem [shape: f32[32,64], index: 1, kind: input, shape index: {}]   ;;  %s640_s2 = inlined_call_operand.vmem [shape: f32[1,64], index: 2, kind: input, shape index: {}]   ;;  %s641_s3 = inlined_call_operand.vmem [shape: f32[64,48], index: 3, kind: input, shape index: {}]   ;;  %s642_s4 = inlined_call_operand.vmem [shape: f32[1,48], index: 4, kind: input, shape index: {}]   ;;  %s643_s5 = inlined_call_operand.vmem [shape: f32[48,16], index: 5, kind: input, shape index: {}]   ;;  %s644_s6 = inlined_call_operand.vmem [shape: f32[1,16], index: 6, kind: input, shape index: {}]   ;;  %s645_s7 = inlined_call_operand.vmem [shape: f32[64,16], index: 7, kind: output, shape index: {}]  }
   0x1 LB: > { %s467_s25 = sadd.s32 4294967295, %s509_s24   ;;  %p471_p0 = scmp.ge.s32.totalorder %s509_s24, 1  ;;  %s509_s24 = sphi %s551_s24, %s17_s24  }
   0x2   : > { %p238_p1 = scmp.lt.s32.totalorder %s509_s24, 5 }
   0x4   : > { %p239_p2 = pnand %p471_p0, %p238_p1 }
   0x5   : > { %s472_s30 = sshll.u32 (!%p239_p2), %s467_s25, 1 }
   0x6   : > { %242 = sbr.rel (%p239_p2) target bundleno = 427 (0x1ab), region = 48  ;;  %p271_p3 = scmp.lt.s32.totalorder (!%p239_p2), %s472_s30, 7 }
   0xb   : > { %v287_v0 = vld [vmem:[%s639_s1 + $0x18] sm:$0xff]  ;;  %v286_v1 = vld [vmem:[%s639_s1 + $0x10] sm:$0xff]  ;;  %v285_v4 = vld [vmem:[%s639_s1 + $0x8] sm:$0xff]  ;;  %s647_s30 = smov (!%p271_p3, %s472_s30), 7  ;;  %vm294_vm0 = vcmask 261120   ;;  %vm338_vm1 = vcmask 523264  }
   0xc   : > { %313 = vmatpush.msra.mxu0 %v287_v0  ;;  %v331_v2 = vld [vmem:[%s641_s3 + $0x38] sm:$0xff]  ;;  %v330_v3 = vld [vmem:[%s641_s3 + $0x30] sm:$0xff]  ;;  %v329_v5 = vld [vmem:[%s641_s3 + $0x28] sm:$0xff]  ;;  %s473_s18 = sshll.u32 %s647_s30, 3  ;;  %vm378_vm2 = vcmask 392192   ;;  %vm408_vm3 = vcmask 130048  }
   0xd   : > { %353 = vmatpush.msra.mxu1 %v331_v2  ;;  %484 = vmatpush.msra.mxu3 %v331_v2  ;;  %v284_v6 = vld [vmem:[%s639_s1] sm:$0xff]  ;;  %s274_s23 = scalar_lea.vmem %s638_s0, %s473_s18  ;;  %v327_v9 = vld [vmem:[%s641_s3 + $0x18] sm:$0xff]  ;;  %v326_v13 = vld [vmem:[%s641_s3 + $0x10] sm:$0xff]  ;;  %s280_s11 = scalar_lea.vmem %s645_s7, %s473_s18 }
   0xe   : > { %314 = vmatpush.msra.mxu0 %v286_v1  ;;  %v328_v7 = vld [vmem:[%s641_s3 + $0x20] sm:$0xff]  ;;  %v283_v11 = vld [vmem:[%s274_s23 + $0x8] sm:$0xff]  ;;  %v371_v18 = vld [vmem:[%s643_s5 + $0x18] sm:$0xff] }
   0xf   : > { %354 = vmatpush.msra.mxu1 %v330_v3  ;;  %485 = vmatpush.msra.mxu3 %v330_v3  ;;  %v282_v8 = vld [vmem:[%s274_s23] sm:$0xff]  ;;  %v290_v12 = vmax.f32 %v283_v11, 0.0  ;;  %v325_v14 = vld [vmem:[%s641_s3 + $0x8] sm:$0xff]  ;;  %v370_v19 = vld [vmem:[%s643_s5 + $0x10] sm:$0xff] }
  0x10   : > { %315 = vmatpush.msra.mxu0 %v285_v4  ;;  %v289_v10 = vmax.f32 %v282_v8, 0.0  ;;  %v324_v15 = vld [vmem:[%s641_s3] sm:$0xff]  ;;  %v373_v16 = vld [vmem:[%s643_s5 + $0x28] sm:$0xff] }
  0x11   : > { %355 = vmatpush.msra.mxu1 %v329_v5  ;;  %486 = vmatpush.msra.mxu3 %v329_v5  ;;  %v372_v17 = vld [vmem:[%s643_s5 + $0x20] sm:$0xff]  ;;  %v369_v27 = vld [vmem:[%s643_s5 + $0x8] sm:$0xff] }
  0x12   : > { %316 = vmatpush.msra.mxu0 %v284_v6  ;;  %395 = vmatpush.msra.mxu2 %v373_v16  ;;  %v500_v20 = vld [vmem:[%s640_s2] ss:$0 sm:$0xff] }
  0x13   : > { %356 = vmatpush.msra.mxu1 %v328_v7  ;;  %487 = vmatpush.msra.mxu3 %v328_v7  ;;  %v368_v28 = vld [vmem:[%s643_s5] sm:$0xff] }
  0x14   : > { %476 = vmatmul.msk.f32.vlgmr.msra.gmra.mxu0 %vm294_vm0, %v289_v10  ;;  %396 = vmatpush.msra.mxu2 %v372_v17  ;;  %v501_v29 = vld [vmem:[%s642_s4] ss:$0 sm:$0xff] }
  0x15   : > { %357 = vmatpush.msra.mxu1 %v327_v9  ;;  %488 = vmatpush.msra.mxu3 %v327_v9  ;;  %v502_v34 = vld [vmem:[%s644_s6] ss:$0 sm:$0xff] }
  0x16   : > { %397 = vmatpush.msra.mxu2 %v371_v18 }
  0x17   : > { %358 = vmatpush.msra.mxu1 %v326_v13  ;;  %489 = vmatpush.msra.mxu3 %v326_v13 }
  0x18   : > { %398 = vmatpush.msra.mxu2 %v370_v19 }
  0x19   : > { %359 = vmatpush.msra.mxu1 %v325_v14  ;;  %490 = vmatpush.msra.mxu3 %v325_v14 }
  0x1a   : > { %399 = vmatpush.msra.mxu2 %v369_v27 }
  0x1b   : > { %360 = vmatpush.msra.mxu1 %v324_v15  ;;  %491 = vmatpush.msra.mxu3 %v324_v15 }
  0x1c   : > { %477 = vmatmul.msk.f32.gmra.mxu0 %vm294_vm0, %v290_v12  ;;  %400 = vmatpush.msra.mxu2 %v368_v28 }
  0x91   : > { %v318_v21 = vpop.f32.mrf.mxu0 }
  0x92   : > { %v319_v22 = vadd.f32 %v500_v20, %v318_v21 }
  0x94   : > { %v333_v23 = vmax.f32 %v319_v22, 0.0 }
  0x96   : > { %478 = vmatmul.msk.f32.vlgmr.msra.gmra.mxu1 %vm338_vm1, %v333_v23 }
  0x99   : > { %v321_v24 = vpop.f32.mrf.mxu0 }
  0x9a   : > { %v322_v25 = vadd.f32 %v500_v20, %v321_v24 }
  0x9c   : > { %v334_v26 = vmax.f32 %v322_v25, 0.0 }
  0x9e   : > { %479 = vmatmul.msk.f32.vlgmr.msra.gmra.mxu3 %vm338_vm1, %v334_v26 }
 0x113   : > { %v362_v30 = vpop.f32.mrf.mxu1 }
 0x114   : > { %v363_v31 = vadd.f32 %v501_v29, %v362_v30 }
 0x116   : > { %480 = vmatmul.msk.f32.vlgmr.msra.gmra.mxu2 %vm378_vm2, %v363_v31 }
 0x121   : > { %v365_v32 = vpop.f32.mrf.mxu3 }
 0x122   : > { %v366_v33 = vadd.f32 %v501_v29, %v365_v32 }
 0x124   : > { %481 = vmatmul.msk.f32.gmra.mxu2 %vm378_vm2, %v366_v33 }
 0x199   : > { %v402_v35 = vpop.f32.mrf.mxu2 }
 0x19a   : > { %v403_v36 = vadd.f32 %v502_v34, %v402_v35 }
 0x19c   : > { %409 = vst.msk [vmem:[%s280_s11] sm:$0xff] %vm408_vm3, %v403_v36 }
 0x1a7   : > { %v405_v37 = vpop.f32.mrf.mxu2 }
 0x1a8   : > { %v406_v38 = vadd.f32 %v502_v34, %v405_v37 }
 0x1aa   : > { %410 = vst.msk [vmem:[%s280_s11 + $0x8] sm:$0xff] %vm408_vm3, %v406_v38 }
 0x1ab PF: > { %s17_s24 = sadd.s32 1, %s509_s24  }
 0x1ac   : > { %p14_p4 = scmp.ge.s32.totalorder %s17_s24, 6  }
 0x1ae   :  { %16 = sbr.rel (!%p14_p4) target bundleno = 1 (0x1), region = 78 }

</bundles_post_ra>
